<compile_context>
chip_gen: v6e
topology: v6e:2x2x1
jax: 0.10.0
libtpu: 0.0.40
codegen_flags: <defaults>
</compile_context>

<pallas_src>
import functools
import math

import jax
import jax.numpy as jnp
from jax import lax
from jax.experimental import pallas as pl
from jax.experimental.pallas import tpu as pltpu


def _round_up(x: int, m: int) -> int:
    return ((x + m - 1) // m) * m


# ----------------------------------------------------------------------------
# Parameter setup (mirrors PositionalEncoding.__init__ exactly)
# ----------------------------------------------------------------------------
def make_pe_buffer(seq_len: int, d_model: int) -> jnp.ndarray:
    max_len = max(5000, seq_len)
    position = jnp.arange(0, max_len, dtype=jnp.float32)[:, None]          # (max_len, 1)
    div_term = jnp.exp(
        jnp.arange(0, d_model, 2, dtype=jnp.float32) * (-math.log(10000.0) / d_model)
    )                                                                       # (ceil(d/2),)
    ang = position * div_term                                               # (max_len, ceil(d/2))
    pe = jnp.zeros((max_len, d_model), dtype=jnp.float32)
    pe = pe.at[:, 0::2].set(jnp.sin(ang))
    if d_model % 2 == 0:
        pe = pe.at[:, 1::2].set(jnp.cos(ang))
    else:
        pe = pe.at[:, 1::2].set(jnp.cos(ang)[:, :-1])
    # pe.unsqueeze(0).transpose(0, 1) -> (max_len, 1, d_model)
    return pe[:, None, :]


# ----------------------------------------------------------------------------
# Kernel:  y = dropout(x + pe_row),  dropout = zero w.p. p, scale 1/(1-p)
#   x_ref : (ts, wl) VMEM tile (lane-dense slice of the (S, B*D) stream)
#   pe_ref: (ts, D)  VMEM tile (read once per row, replicated in-kernel)
# ----------------------------------------------------------------------------
def _pe_dropout_kernel(seed_ref, x_ref, pe_ref, o_ref, *,
                       p: float, training: bool, d_model: int):
    ts, wl = x_ref.shape
    rep = wl // d_model                                     # lane block is a multiple of D

    pe_tile = pe_ref[...]                                   # (ts, D), already x dtype
    pe_row = jnp.tile(pe_tile, (1, rep)) if rep > 1 else pe_tile
    y = x_ref[...] + pe_row                                 # (ts, wl)

    if training and p >= 1.0:                               # explicit guard (no inf*0)
        o_ref[...] = jnp.zeros_like(o_ref)
        return

    if training and p > 0.0:
        # Counter-based dropout mask = hash(seed, global row, global col).
        # Heavy mixing on the narrow (ts,1)/(1,wl) vectors (amortized over the
        # other axis); per element only an xor-combine plus multiply/xorshift
        # rounds -> keeps the VALU slot clear on v7x where HBM no longer hides it.
        row = (pl.program_id(0) * ts
               + lax.broadcasted_iota(jnp.int32, (ts, 1), 0)).astype(jnp.uint32)
        col = (pl.program_id(1) * wl
               + lax.broadcasted_iota(jnp.int32, (1, wl), 1)).astype(jnp.uint32)
        rh = row * jnp.uint32(0x9E3779B1) + seed_ref[0].astype(jnp.uint32) * jnp.uint32(0x85EBCA6B)
        rh = rh ^ (rh >> jnp.uint32(16))
        rh = rh * jnp.uint32(0x7FEB352D)
        rh = rh ^ (rh >> jnp.uint32(15))                    # (ts, 1): per-row cost only
        ch = col * jnp.uint32(0xC2B2AE35)                   # (1, wl): per-col cost only
        u = rh ^ ch                                         # broadcast -> (ts, wl)
        u = u ^ (u >> jnp.uint32(16))
        u = u * jnp.uint32(0x85EBCA6B)
        u = u ^ (u >> jnp.uint32(13))
        u = u * jnp.uint32(0xC2B2AE35)
        r24 = (u >> jnp.uint32(8)).astype(jnp.int32)        # top 24 bits, int compare
        keep = r24 >= jnp.int32(int(round(p * (1 << 24))))  # keep w.p. (1 - p)
        scale = jnp.float32(1.0 / (1.0 - p))                # scale in f32 (no bf16 bias)
        y = jnp.where(keep, y.astype(jnp.float32) * scale, jnp.float32(0.0))

    o_ref[...] = y.astype(o_ref.dtype)


# ----------------------------------------------------------------------------
# Wrapper
# ----------------------------------------------------------------------------
def _vmem_ceiling_bytes() -> int:
    """Generation-aware ceiling for vmem_limit_bytes."""
    try:
        phys = int(getattr(pltpu.get_tpu_info(), "vmem_capacity_bytes", 0) or 0)
    except Exception:
        phys = 0
    if phys <= 0:
        phys = 64 << 20                      # conservative: assume v7x-class VMEM
    # v7x-class (<=64 MiB physical): stay at 32 MiB; v5e/v6e (128 MiB): 48 MiB.
    return (32 << 20) if phys <= (64 << 20) else (48 << 20)


def positional_encoding_forward(x, pe, *, p=0.1, training=True, seed=0, ts=None, wl=None):
    """x: (S, B, D), pe: (max_len, 1, D) -> (S, B, D) = dropout(x + pe[:S])."""
    S, B, D = x.shape
    W = B * D
    itemsize = jnp.dtype(x.dtype).itemsize

    # Lane-dense 2-D views (row-major contiguous -> free reshape).  pe is read
    # once per row as (S, D) and lane-replicated across batch inside the kernel.
    x2d = x.reshape(S, W)
    pe2d = pe[:S, 0, :].astype(x.dtype)

    sub = {1: 32, 2: 16}.get(itemsize, 8)    # sublane quantum per dtype packing
    vmem_ceiling = _vmem_ceiling_bytes()
    block_budget = (vmem_ceiling * 3) // 5   # ~60% of requested limit for blocks

    # ---- lane (minor-dim) blocking for very wide rows ------------------------
    if wl is None or wl <= 0:
        if W * itemsize * sub <= (4 << 20):
            wl = W                            # a whole row block fits comfortably
        else:
            period = (D * 128) // math.gcd(D, 128)            # lcm(D, 128)
            lane_budget = ((2 << 20) // (sub * itemsize) // period) * period
            wl = min(W, max(period, lane_budget))
    if wl != W and (wl % D != 0 or wl % 128 != 0):
        wl = W                                # pe-phase / lane alignment impossible
    wl = min(wl, W)

    # ---- sequence tiling ------------------------------------------------------
    if ts is None or ts <= 0:
        ts = max(sub, (4 << 20) // max(wl * itemsize, 1))     # ~4 MiB of x per block
    # Double-buffered working set: 2 * (x_in + x_out + pe) blocks <= budget.
    vmem_rows = max(sub, block_budget // max(2 * itemsize * (2 * wl + D), 1))
    ts = min(ts, vmem_rows)
    if S >= 2 * sub:                          # keep >=2 seq steps (v7x dual-TC split)
        ts = min(ts, _round_up((S + 1) // 2, sub))
    ts = min(ts, _round_up(S, sub))
    ts = max(sub, (ts // sub) * sub)

    grid = (pl.cdiv(S, ts), pl.cdiv(W, wl))   # ragged tails handled by Pallas

    x_blk = ts * wl * itemsize
    pe_blk = ts * D * itemsize
    vmem_need = 2 * (2 * x_blk + pe_blk) + (4 << 20)
    vmem_limit = int(min(max(vmem_need, 16 << 20), vmem_ceiling))

    seed_arr = jnp.asarray([seed], dtype=jnp.int32)
    kernel = functools.partial(
        _pe_dropout_kernel, p=float(p), training=bool(training), d_model=D)

    out2d = pl.pallas_call(
        kernel,
        out_shape=jax.ShapeDtypeStruct((S, W), x.dtype),
        grid_spec=pltpu.PrefetchScalarGridSpec(
            num_scalar_prefetch=1,                       # seed lands in SMEM
            grid=grid,
            in_specs=[
                pl.BlockSpec((ts, wl), lambda i, j, seed: (i, j)),
                pl.BlockSpec((ts, D), lambda i, j, seed: (i, 0)),
            ],
            out_specs=pl.BlockSpec((ts, wl), lambda i, j, seed: (i, j)),
        ),
        compiler_params=pltpu.CompilerParams(
            dimension_semantics=("parallel", "parallel"),  # both axes independent
            vmem_limit_bytes=vmem_limit,
        ),
        cost_estimate=pl.CostEstimate(
            flops=2 * S * W,
            transcendentals=0,
            bytes_accessed=(2 * S * W + S * D) * itemsize,
        ),
    )(seed_arr, x2d, pe2d)

    return out2d.reshape(S, B, D)


# ----------------------------------------------------------------------------
if __name__ == "__main__":
    SEQ, BATCH, D_MODEL = 8, 4, 32            # B*D = 128 -> fully lane-dense blocks
    DROPOUT_P = 0.1

    key = jax.random.PRNGKey(0)
    x = jax.random.normal(key, (SEQ, BATCH, D_MODEL), dtype=jnp.float32)
    pe = make_pe_buffer(SEQ, D_MODEL)         # (5000, 1, 32) buffer, like register_buffer

    # Training-mode forward (dropout active, deterministic via fixed seed).
    y_train = positional_encoding_forward(x, pe, p=DROPOUT_P, training=True, seed=0)
    # Eval-mode forward (dropout is identity) for an exact sanity check.
    y_eval = positional_encoding_forward(x, pe, p=DROPOUT_P, training=False)
    jax.block_until_ready(y_train)
    jax.block_until_ready(y_eval)

    ref = x + pe[:SEQ]
    assert y_train.shape == x.shape and y_train.dtype == x.dtype
    assert jnp.allclose(y_eval, ref, atol=1e-6), "eval-mode mismatch vs reference"
    # Every train-mode element is either dropped (0) or ref scaled by 1/(1-p).
    scaled = ref / (1.0 - DROPOUT_P)
    ok = jnp.isclose(y_train, scaled, atol=1e-5) | (y_train == 0.0)
    assert bool(jnp.all(ok)), "train-mode values are not {0, ref/(1-p)}"

    # Ragged-tail coverage: S not a multiple of the seq tile, no host-side pad.
    S2 = 12
    x2 = jax.random.normal(jax.random.PRNGKey(1), (S2, BATCH, D_MODEL), jnp.float32)
    y2 = positional_encoding_forward(x2, pe, p=DROPOUT_P, training=False, ts=8)
    jax.block_until_ready(y2)
    assert jnp.allclose(y2, x2 + pe[:S2], atol=1e-6), "ragged-tile mismatch vs reference"

    print("KERNEL_OK")
</pallas_src>

<mosaic_0001>
module attributes {stable_mosaic.version = 11 : i64} {
  func.func @_pe_dropout_kernel(%arg0: i32, %arg1: i32, %arg2: memref<1xi32, #tpu.memory_space<smem>>, %arg3: memref<8x128xf32, #tpu.memory_space<vmem>>, %arg4: memref<8x32xf32, #tpu.memory_space<vmem>>, %arg5: memref<8x128xf32, #tpu.memory_space<vmem>>) attributes {dimension_semantics = [#tpu.dimension_semantics<parallel>, #tpu.dimension_semantics<parallel>], iteration_bounds = array<i64: 1, 1>, scalar_prefetch = 1 : i64, scratch_operands = 0 : i64, tpu.core_type = #tpu.core_type<tc>, window_params = [{transform_indices = @transform_0, window_bounds = array<i64: 8, 128>}, {transform_indices = @transform_1, window_bounds = array<i64: 8, 32>}, {transform_indices = @transform_2, window_bounds = array<i64: 8, 128>}]} {
    %c0 = arith.constant 0 : index
    %c0_0 = arith.constant 0 : index
    %0 = vector.load %arg4[%c0, %c0_0] : memref<8x32xf32, #tpu.memory_space<vmem>>, vector<8x32xf32>
    %1 = tpu.concatenate %0, %0, %0, %0 in 1 : vector<8x32xf32>, vector<8x32xf32>, vector<8x32xf32>, vector<8x32xf32> -> vector<8x128xf32>
    %c0_1 = arith.constant 0 : index
    %c0_2 = arith.constant 0 : index
    %2 = vector.load %arg3[%c0_1, %c0_2] : memref<8x128xf32, #tpu.memory_space<vmem>>, vector<8x128xf32>
    %3 = arith.addf %2, %1 : vector<8x128xf32>
    %c8_i32 = arith.constant 8 : i32
    %4 = arith.muli %arg0, %c8_i32 : i32
    %5 = tpu.iota {dimensions = array<i32: 0>} : vector<8x1xi32>
    %6 = vector.broadcast %4 : i32 to vector<8x1xi32>
    %7 = arith.addi %6, %5 : vector<8x1xi32>
    %c128_i32 = arith.constant 128 : i32
    %8 = arith.muli %arg1, %c128_i32 : i32
    %9 = tpu.iota {dimensions = array<i32: 1>} : vector<1x128xi32>
    %10 = vector.broadcast %8 : i32 to vector<1x128xi32>
    %11 = arith.addi %10, %9 : vector<1x128xi32>
    %c-1640531535_i32 = arith.constant -1640531535 : i32
    %12 = vector.broadcast %c-1640531535_i32 : i32 to vector<8x1xi32>
    %13 = arith.muli %7, %12 : vector<8x1xi32>
    %c0_3 = arith.constant 0 : index
    %14 = memref.load %arg2[%c0_3] : memref<1xi32, #tpu.memory_space<smem>>
    %c-2048144789_i32 = arith.constant -2048144789 : i32
    %15 = arith.muli %14, %c-2048144789_i32 : i32
    %16 = vector.broadcast %15 : i32 to vector<8x1xi32>
    %17 = arith.addi %13, %16 : vector<8x1xi32>
    %c16_i32 = arith.constant 16 : i32
    %18 = vector.broadcast %c16_i32 : i32 to vector<8x1xi32>
    %19 = arith.shrui %17, %18 : vector<8x1xi32>
    %20 = arith.xori %17, %19 : vector<8x1xi32>
    %c2146121005_i32 = arith.constant 2146121005 : i32
    %21 = vector.broadcast %c2146121005_i32 : i32 to vector<8x1xi32>
    %22 = arith.muli %20, %21 : vector<8x1xi32>
    %c15_i32 = arith.constant 15 : i32
    %23 = vector.broadcast %c15_i32 : i32 to vector<8x1xi32>
    %24 = arith.shrui %22, %23 : vector<8x1xi32>
    %25 = arith.xori %22, %24 : vector<8x1xi32>
    %c-1028477387_i32 = arith.constant -1028477387 : i32
    %26 = vector.broadcast %c-1028477387_i32 : i32 to vector<1x128xi32>
    %27 = arith.muli %11, %26 : vector<1x128xi32>
    %28 = vector.broadcast %25 : vector<8x1xi32> to vector<8x128xi32>
    %29 = vector.broadcast %27 : vector<1x128xi32> to vector<8x128xi32>
    %30 = arith.xori %28, %29 : vector<8x128xi32>
    %c16_i32_4 = arith.constant 16 : i32
    %31 = vector.broadcast %c16_i32_4 : i32 to vector<8x128xi32>
    %32 = arith.shrui %30, %31 : vector<8x128xi32>
    %33 = arith.xori %30, %32 : vector<8x128xi32>
    %c-2048144789_i32_5 = arith.constant -2048144789 : i32
    %34 = vector.broadcast %c-2048144789_i32_5 : i32 to vector<8x128xi32>
    %35 = arith.muli %33, %34 : vector<8x128xi32>
    %c13_i32 = arith.constant 13 : i32
    %36 = vector.broadcast %c13_i32 : i32 to vector<8x128xi32>
    %37 = arith.shrui %35, %36 : vector<8x128xi32>
    %38 = arith.xori %35, %37 : vector<8x128xi32>
    %c-1028477387_i32_6 = arith.constant -1028477387 : i32
    %39 = vector.broadcast %c-1028477387_i32_6 : i32 to vector<8x128xi32>
    %40 = arith.muli %38, %39 : vector<8x128xi32>
    %c8_i32_7 = arith.constant 8 : i32
    %41 = vector.broadcast %c8_i32_7 : i32 to vector<8x128xi32>
    %42 = arith.shrui %40, %41 : vector<8x128xi32>
    %c1677722_i32 = arith.constant 1677722 : i32
    %43 = vector.broadcast %c1677722_i32 : i32 to vector<8x128xi32>
    %44 = arith.cmpi sge, %42, %43 : vector<8x128xi32>
    %cst = arith.constant 1.11111116 : f32
    %45 = vector.broadcast %cst : f32 to vector<8x128xf32>
    %46 = arith.mulf %3, %45 : vector<8x128xf32>
    %cst_8 = arith.constant 0.000000e+00 : f32
    %47 = vector.broadcast %cst_8 : f32 to vector<8x128xf32>
    %48 = arith.select %44, %46, %47 : vector<8x128xi1>, vector<8x128xf32>
    %c0_9 = arith.constant 0 : index
    %c0_10 = arith.constant 0 : index
    %49 = vector.load %arg5[%c0_9, %c0_10] : memref<8x128xf32, #tpu.memory_space<vmem>>, vector<8x128xf32>
    tpu.vector_store %arg5[%c0_9, %c0_10], %48 {strides = array<i32>} : memref<8x128xf32, #tpu.memory_space<vmem>>, vector<8x128xf32>,
    return
  }
  func.func @transform_0(%arg0: i32, %arg1: i32, %arg2: memref<1xi32, #tpu.memory_space<smem>>) -> (i32, i32) {
    %c0_i32 = arith.constant 0 : i32
    return %arg0, %arg1 : i32, i32
  }
  func.func @transform_1(%arg0: i32, %arg1: i32, %arg2: memref<1xi32, #tpu.memory_space<smem>>) -> (i32, i32) {
    %c0_i32 = arith.constant 0 : i32
    %c0_i32_0 = arith.constant 0 : i32
    return %arg0, %c0_i32 : i32, i32
  }
  func.func @transform_2(%arg0: i32, %arg1: i32, %arg2: memref<1xi32, #tpu.memory_space<smem>>) -> (i32, i32) {
    %c0_i32 = arith.constant 0 : i32
    return %arg0, %arg1 : i32, i32
  }
}

</mosaic_0001>

<bundles_post_ra>
// kernel: tpu_custom_call.1
= control target key start
LH: loop header
LB: loop body
LE: loop exit
PB: predicated region body
PF: predicated region fallthrough
CT: control target
= control target key end

     0   :  { %9 = vsyncpa [#allocation5], 0  ;;  %s216_s0 = inlined_call_operand.<no memory space> [shape: s32[1], index: 0, kind: input, shape index: {}]   ;;  %s217_s1 = inlined_call_operand.hbm [shape: f32[8,128], index: 1, kind: input, shape index: {}]   ;;  %s218_s2 = inlined_call_operand.hbm [shape: f32[8,32], index: 2, kind: input, shape index: {}]   ;;  %s219_s3 = inlined_call_operand.hbm [shape: f32[8,128], index: 3, kind: output, shape index: {}]  }
   0x1   :  { %10 = vsyncpa [#allocation8], 0 }
   0x2   :  { %11 = vsyncpa [#allocation6], 0  ;;  %s178_s12 = smov [#allocation4]   ;;  %s179_s14 = smov [#allocation7]  }
   0x3   :  { %s18_s13 = sshll.u32 %s178_s12, 4  ;;  %s28_s15 = sshll.u32 %s179_s14, 4  ;;  %s19_s13 = int_to_ptr.vmem [resolvable:$true] %s18_s13  ;;  %s29_s15 = int_to_ptr.vmem [resolvable:$true] %s28_s15 }
   0x4   :  { %s120_s16 = scalar_lea.vmem %s19_s13, 128  ;;  %p125_p1 = scmp.lt.s32.totalorder %s19_s13, %s19_s13 }
   0x5   :  { %p121_p0 = scmp.ne.s32.totalorder %s19_s13, %s120_s16  ;;  %p126_p2 = scmp.lt.s32.totalorder %s120_s16, %s120_s16 }
   0x7   :  { %p127_p3 = por %p126_p2, %p125_p1 }
   0x9   :  { %p128_p4 = pnand %p127_p3, %p121_p0 }
   0xb   :  { %131 = shalt.err (!%p128_p4)
}
   0xc   :  { %21 = dma.hbm_to_vmem [thread:$0]  %s217_s1, 128, %s19_s13, [#allocation5]  }
   0xd   :  { %s140_s19 = scalar_lea.vmem %s29_s15, 128  ;;  %p145_p6 = scmp.lt.s32.totalorder %s29_s15, %s29_s15 }
   0xe   :  { %p141_p5 = scmp.ne.s32.totalorder %s29_s15, %s140_s19  ;;  %p146_p7 = scmp.lt.s32.totalorder %s140_s19, %s140_s19 }
  0x10   :  { %p147_p8 = por %p146_p7, %p145_p6 }
  0x12   :  { %p148_p9 = pnand %p147_p8, %p141_p5 }
  0x14   :  { %151 = shalt.err (!%p148_p9)
}
  0x15   :  { %31 = dma.hbm_to_vmem [thread:$0]  %s218_s2, 128, %s29_s15, [#allocation8]  }
  0x16   :  { %172 = dma.done.wait [#allocation5], 128  }
  0x17   :  { %173 = vsyncadd [#allocation5], 4294967168 }
  0x18   :  { %174 = dma.done.wait [#allocation8], 128  }
  0x19   :  { %175 = vsyncadd [#allocation8], 4294967168  ;;  %v38_v0 = vld [vmem:[#allocation7] sm:$0xff]  ;;  %s180_s22 = smov 32   ;;  %s181_s23 = smov 96   ;;  %v58_v1 = vlaneseq  ;;  %vm49_vm0 = vcmask 261120  }
  0x1a   :  { %40 = vrot.lane.b32.xlu0 %v38_v0, %s180_s22  ;;  %46 = vrot.lane.b32.xlu1 %v38_v0, %s181_s23  ;;  %s182_s1 = smov 64   ;;  %s69_s26 = smul.u32 2246822507, %s216_s0  ;;  %vm51_vm1 = vcmask 523264   ;;  %vm53_vm2 = vcmask 785408   ;;  %v55_v24 = vld [vmem:[#allocation4] sm:$0xff] }
  0x1b   :  { %v59_v2 = vshrl.u32 %v58_v1, 7  ;;  %v64_v9 = vand.u32 127, %v58_v1  ;;  %s183_s0 = smov [#allocation9]  }
  0x1c   :  { %v70_v4 = vstv %s69_s26  ;;  %s96_s2 = sshll.u32 %s183_s0, 4  ;;  %s97_s2 = int_to_ptr.vmem [resolvable:$true] %s96_s2 }
  0x1d   :  { %v67_v3 = vmul.u32 2654435761, %v59_v2  ;;  %v77_v12 = vmul.u32 3266489909, %v64_v9  ;;  %s152_s27 = scalar_lea.vmem %s97_s2, 128  ;;  %p157_p11 = scmp.lt.s32.totalorder %s97_s2, %s97_s2 }
  0x1e   :  { %43 = vrot.lane.b32.xlu0 %v38_v0, %s182_s1  ;;  %p153_p10 = scmp.ne.s32.totalorder %s97_s2, %s152_s27  ;;  %p158_p12 = scmp.lt.s32.totalorder %s152_s27, %s152_s27 }
  0x1f   :  { %v71_v5 = vadd.s32 %v70_v4, %v67_v3 }
  0x20   :  { %p159_p13 = por %p158_p12, %p157_p11 }
  0x21   :  { %v72_v6 = vshrl.u32 %v71_v5, 16 }
  0x22   :  { %p160_p0 = pnand %p159_p13, %p153_p10 }
  0x23   :  { %v73_v7 = vxor.u32 %v72_v6, %v71_v5 }
  0x25   :  { %v74_v8 = vmul.u32 2146121005, %v73_v7 }
  0x27   :  { %v75_v10 = vshrl.u32 %v74_v8, 15 }
  0x29   :  { %v76_v11 = vxor.u32 %v75_v10, %v74_v8 }
  0x2b   :  { %v78_v13 = vxor.u32 %v77_v12, %v76_v11 }
  0x2d   :  { %v79_v14 = vshrl.u32 %v78_v13, 16 }
  0x2f   :  { %v80_v15 = vxor.u32 %v79_v14, %v78_v13 }
  0x31   :  { %v81_v16 = vmul.u32 2246822507, %v80_v15 }
  0x33   :  { %v82_v17 = vshrl.u32 %v81_v16, 13 }
  0x35   :  { %v83_v18 = vxor.u32 %v82_v17, %v81_v16 }
  0x37   :  { %v84_v20 = vmul.u32 3266489909, %v83_v18 }
  0x39   :  { %v85_v25 = vshrl.u32 %v84_v20, 8 }
  0x3b   :  { %vm86_vm3 = vcmp.ge.s32.totalorder %v85_v25, 1677722 }
  0x8c   :  { %v41_v19 = vpop.permute.xlu0 %40  ;;  %v47_v21 = vpop.permute.xlu1 %46 }
  0x8d   :  { %v50_v22 = vsel %vm49_vm0, %v38_v0, %v41_v19 }
  0x90   :  { %v44_v23 = vpop.permute.xlu0 %43 }
  0x91   :  { %v52_v26 = vsel %vm51_vm1, %v50_v22, %v44_v23 }
  0x92   :  { %v54_v27 = vsel %vm53_vm2, %v52_v26, %v47_v21 }
  0x93   :  { %v56_v28 = vadd.f32 %v55_v24, %v54_v27 }
  0x95   :  { %v87_v29 = vmul.f32 1.1111112, %v56_v28 }
  0x97   :  { %v88_v30 = vsel %vm86_vm3, %v87_v29, 0.0 }
  0x98   :  { %89 = vst [vmem:[#allocation9] sm:$0xff] %v88_v30 }
  0x99   :  { %163 = shalt.err (!%p160_p0)
}
  0x9a   :  { %99 = dma.vmem_to_hbm [thread:$0]  %s97_s2, 128, %s219_s3, [#allocation6]  }
  0x9b   :  { %176 = dma.done.wait [#allocation6], 128  }
  0x9c   :  { %177 = vsyncadd [#allocation6], 4294967168 }
  0x9d   :  { %103 = vsyncpa [#allocation5], 1 }
  0x9e   :  { %104 = vsyncpa [#allocation8], 1 }
  0x9f   :  { %105 = vsyncpa [#allocation6], 1 }

</bundles_post_ra>
